<compile_context>
chip_gen: v5e
topology: v5e:2x2
jax: 0.10.0
libtpu: 0.0.40
codegen_flags: <defaults>
</compile_context>

<pallas_src>
import functools

import jax
import jax.numpy as jnp
from jax import lax
from jax.experimental import pallas as pl
from jax.experimental.pallas import tpu as pltpu

NEG_SLOPE = 0.01   # nn.LeakyReLU default
BN_EPS = 1e-5      # nn.BatchNorm2d default


# --------------------------------------------------------------------------
# Kernel 1: ConvTranspose2d(C, C, kernel_size=2, stride=2)
# stride == kernel_size -> no overlap:
#   y[n, 2i+ky, 2j+kx, co] = sum_ci x[n, i, j, ci] * w[ci, co, ky, kx] + b[co]
# All 4 taps computed by one wide (NHW, Cin) @ (Cin, 4*Cout) bf16 matmul;
# output stays in tap-plane layout (interleave done outside, see TODO above).
# --------------------------------------------------------------------------
def upconv2x2_kernel(x_ref, w_ref, b_ref, out_ref, *, N, H, W, Cin, Cout4):
    # x_ref: (N,H,W,Cin) f32   w_ref: (Cin, 4*Cout) bf16, cols ordered [ky][kx][co]
    # b_ref: (1, 4*Cout) f32   out_ref: (N,H,W,4*Cout) bf16 (tap planes)
    x = x_ref[...].reshape(N * H * W, Cin).astype(jnp.bfloat16)
    y = jnp.dot(x, w_ref[...], preferred_element_type=jnp.float32) + b_ref[...]
    out_ref[...] = y.reshape(N, H, W, Cout4).astype(out_ref.dtype)


# --------------------------------------------------------------------------
# Kernel 2: fused pad + concat([x2, x1_up]) + DoubleConv
#   DoubleConv = (Conv3x3 pad1 -> BatchNorm(batch stats) -> LeakyReLU) x 2
# Each 3x3 conv = 9 shifted-tap bf16 matmuls accumulated in f32.
# --------------------------------------------------------------------------
def doubleconv_kernel(x2_ref, x1_ref, w1_ref, b1_ref, g1_ref, be1_ref,
                      w2_ref, b2_ref, g2_ref, be2_ref, out_ref,
                      *, N, H, W, C2, Cup, Cout, py, px, Hu, Wu):
    # x2_ref : (N, H, W, C2) f32 skip connection
    # x1_ref : (N, Hu, Wu, Cup) bf16 upsampled tensor, placed at offset (py, px)
    # w1_ref : (9, C2+Cup, Cout) bf16, w2_ref: (9, Cout, Cout) bf16, tap k=dy*3+dx
    # b/g/be : (1, C) f32
    Cin = C2 + Cup
    NHW = N * H * W

    def zero_border(ref, C):
        zr = jnp.zeros((N, 1, W + 2, C), jnp.float32)
        ref[:, 0:1, :, :] = zr                       # full-width, lane-dense
        ref[:, H + 1:H + 2, :, :] = zr
        zc = jnp.zeros((N, H + 2, 1, C), jnp.float32)
        ref[:, :, 0:1, :] = zc
        ref[:, :, W + 1:W + 2, :] = zc

    def conv3x3(src_ref, w_ref_, cin, bias):
        # 9 shifted-tap matmuls accumulated in f32 (no im2col col matrix).
        acc = jnp.zeros((NHW, Cout), jnp.float32)
        k = 0
        for dy in range(3):
            for dx in range(3):
                patch = src_ref[:, dy:dy + H, dx:dx + W, :]
                patch = patch.reshape(NHW, cin).astype(jnp.bfloat16)
                acc = acc + jnp.dot(patch, w_ref_[k],
                                    preferred_element_type=jnp.float32)
                k += 1
        return acc + bias

    def bn_lrelu(y, gamma, beta):
        # training-mode batch statistics, two-pass variance (no cancellation)
        mean = jnp.mean(y, axis=0, keepdims=True)
        centered = y - mean
        var = jnp.mean(centered * centered, axis=0, keepdims=True)
        yhat = centered * lax.rsqrt(var + BN_EPS) * gamma + beta
        return jnp.where(yhat > 0, yhat, NEG_SLOPE * yhat)

    exact_fit = (py == 0 and px == 0 and Hu == H and Wu == W)

    # ---- stage 1: padded concat input -> conv1 -> BN -> LeakyReLU ----------
    def stage1(xcp_ref):
        # xcp_ref: (N, H+2, W+2, Cin) f32, zero-padded concat of [x2, up(x1)]
        if exact_fit:
            zero_border(xcp_ref, Cin)            # only the conv halo needs zeros
        else:
            # rare non-exact-fit path also needs the F.pad gap zeroed
            xcp_ref[...] = jnp.zeros_like(xcp_ref)
        xcp_ref[:, 1:H + 1, 1:W + 1, 0:C2] = x2_ref[...]
        xcp_ref[:, 1 + py:1 + py + Hu, 1 + px:1 + px + Wu, C2:Cin] = (
            x1_ref[...].astype(jnp.float32))
        a1 = bn_lrelu(conv3x3(xcp_ref, w1_ref, Cin, b1_ref[...]),
                      g1_ref[...], be1_ref[...])
        # stash a1 in out_ref (same element count) so the xcp scratch can be
        # released before the mid scratch is allocated (peak = max, not sum)
        out_ref[...] = a1.reshape(N, H, W, Cout)

    pl.run_scoped(stage1, pltpu.VMEM((N, H + 2, W + 2, Cin), jnp.float32))

    # ---- stage 2: conv2 -> BN -> LeakyReLU ---------------------------------
    def stage2(mid_ref):
        # mid_ref: (N, H+2, W+2, Cout) f32, zero-padded intermediate
        zero_border(mid_ref, Cout)               # interior fully overwritten
        mid_ref[:, 1:H + 1, 1:W + 1, :] = out_ref[...]
        a2 = bn_lrelu(conv3x3(mid_ref, w2_ref, Cout, b2_ref[...]),
                      g2_ref[...], be2_ref[...])
        out_ref[...] = a2.reshape(N, H, W, Cout)

    pl.run_scoped(stage2, pltpu.VMEM((N, H + 2, W + 2, Cout), jnp.float32))


# --------------------------------------------------------------------------
# JAX wrappers (weight re-layout, interleave glue, NCHW<->NHWC)
# --------------------------------------------------------------------------
def _vmem_limit_bytes(nbytes):
    # generation-aware: ~80% of physical VMEM, never below 16 MiB, never more
    # than ~2x the estimated working set (headroom for compiler temporaries).
    try:
        cap = int(pltpu.get_tpu_info().vmem_capacity_bytes)
    except Exception:                       # interpret mode / older jaxlib
        cap = 64 * 1024 * 1024
    budget = int(0.8 * cap)
    return max(16 * 1024 * 1024, min(budget, int(2 * nbytes)))


def upconv2x2(x_nhwc, w, b):
    # w: PyTorch ConvTranspose2d weight (Cin, Cout, 2, 2) -> fused (Cin, 4*Cout)
    N, H, W, Cin = x_nhwc.shape
    Cout = w.shape[1]
    wf = jnp.transpose(w, (0, 2, 3, 1)).reshape(Cin, 4 * Cout).astype(jnp.bfloat16)
    b4 = jnp.tile(b, 4).reshape(1, 4 * Cout).astype(jnp.float32)
    x32 = x_nhwc.astype(jnp.float32)
    nbytes = 4 * x32.size + 2 * wf.size + 4 * b4.size + 2 * N * H * W * 4 * Cout
    out = pl.pallas_call(
        functools.partial(upconv2x2_kernel, N=N, H=H, W=W, Cin=Cin, Cout4=4 * Cout),
        out_shape=jax.ShapeDtypeStruct((N, H, W, 4 * Cout), jnp.bfloat16),
        in_specs=[pl.BlockSpec(memory_space=pltpu.MemorySpace.VMEM)] * 3,
        out_specs=pl.BlockSpec(memory_space=pltpu.MemorySpace.VMEM),
        compiler_params=pltpu.CompilerParams(
            vmem_limit_bytes=_vmem_limit_bytes(nbytes)),
    )(x32, wf, b4)
    # pixel-shuffle interleave of the 4 (ky,kx) tap planes (bf16, XLA glue;
    # see TODO at top about moving this into the doubleconv kernel).
    out = out.reshape(N, H, W, 2, 2, Cout).transpose(0, 1, 3, 2, 4, 5)
    return out.reshape(N, 2 * H, 2 * W, Cout)


def doubleconv(x2_nhwc, x1u_nhwc, py, px, w1, b1, g1, be1, w2, b2, g2, be2):
    # w1: (Cout, Cin, 3, 3), w2: (Cout, Cout, 3, 3)  (PyTorch Conv2d layout)
    N, H, W, C2 = x2_nhwc.shape
    _, Hu, Wu, Cup = x1u_nhwc.shape
    Cin = C2 + Cup
    Cout = w1.shape[0]
    # per-tap weight layout (9, cin, cout), tap index k = dy*3 + dx
    w1c = jnp.transpose(w1, (2, 3, 1, 0)).reshape(9, Cin, Cout).astype(jnp.bfloat16)
    w2c = jnp.transpose(w2, (2, 3, 1, 0)).reshape(9, Cout, Cout).astype(jnp.bfloat16)
    r = lambda v: v.reshape(1, -1).astype(jnp.float32)
    # run_scoped gives xcp/mid sequential lifetimes -> peak = max, not sum
    scratch_bytes = 4 * N * (H + 2) * (W + 2) * max(Cin, Cout)
    io_bytes = (4 * x2_nhwc.size + 2 * x1u_nhwc.size
                + 2 * (w1c.size + w2c.size) + 4 * N * H * W * Cout
                + 4 * 6 * Cout)
    nbytes = scratch_bytes + io_bytes
    return pl.pallas_call(
        functools.partial(doubleconv_kernel, N=N, H=H, W=W, C2=C2, Cup=Cup,
                          Cout=Cout, py=py, px=px, Hu=Hu, Wu=Wu),
        out_shape=jax.ShapeDtypeStruct((N, H, W, Cout), jnp.float32),
        in_specs=[pl.BlockSpec(memory_space=pltpu.MemorySpace.VMEM)] * 10,
        out_specs=pl.BlockSpec(memory_space=pltpu.MemorySpace.VMEM),
        compiler_params=pltpu.CompilerParams(
            vmem_limit_bytes=_vmem_limit_bytes(nbytes)),
    )(x2_nhwc.astype(jnp.float32), x1u_nhwc.astype(jnp.bfloat16),
      w1c, r(b1), r(g1), r(be1), w2c, r(b2), r(g2), r(be2))


def up_forward(x1_nchw, x2_nchw, p):
    """Up.forward with bilinear=False (ConvTranspose2d upsampling)."""
    x1 = jnp.transpose(x1_nchw, (0, 2, 3, 1)).astype(jnp.float32)  # NCHW -> NHWC
    x2 = jnp.transpose(x2_nchw, (0, 2, 3, 1)).astype(jnp.float32)
    x1u = upconv2x2(x1, p['w_up'], p['b_up'])                      # bf16 NHWC
    diff_y = x2.shape[1] - x1u.shape[1]
    diff_x = x2.shape[2] - x1u.shape[2]
    # F.pad + torch.cat([x2, x1], dim=1) are fused into the doubleconv kernel
    y = doubleconv(x2, x1u, diff_y // 2, diff_x // 2,
                   p['w1'], p['b1'], p['g1'], p['be1'],
                   p['w2'], p['b2'], p['g2'], p['be2'])
    return jnp.transpose(y, (0, 3, 1, 2))  # NHWC -> NCHW


# --------------------------------------------------------------------------
# Pure-JAX reference (HIGHEST precision; correctness check only)
# --------------------------------------------------------------------------
def ref_up_forward(x1, x2, p):
    hp = lax.Precision.HIGHEST

    def conv2d(x, w, b):
        y = lax.conv_general_dilated(x, w, (1, 1), ((1, 1), (1, 1)),
                                     dimension_numbers=('NCHW', 'OIHW', 'NCHW'),
                                     precision=hp)
        return y + b[None, :, None, None]

    def bn_lrelu(x, g, be):
        mean = jnp.mean(x, axis=(0, 2, 3), keepdims=True)
        var = jnp.mean((x - mean) ** 2, axis=(0, 2, 3), keepdims=True)
        xh = (x - mean) / jnp.sqrt(var + BN_EPS)
        xh = xh * g[None, :, None, None] + be[None, :, None, None]
        return jnp.where(xh > 0, xh, NEG_SLOPE * xh)

    N, C, H, W = x1.shape
    Cout_up = p['w_up'].shape[1]
    up = jnp.zeros((N, Cout_up, 2 * H, 2 * W), jnp.float32)
    for ky in range(2):
        for kx in range(2):
            contrib = jnp.einsum('nchw,cd->ndhw', x1, p['w_up'][:, :, ky, kx],
                                 precision=hp)
            up = up.at[:, :, ky::2, kx::2].set(contrib)
    up = up + p['b_up'][None, :, None, None]
    x = jnp.concatenate([x2, up], axis=1)
    x = bn_lrelu(conv2d(x, p['w1'], p['b1']), p['g1'], p['be1'])
    x = bn_lrelu(conv2d(x, p['w2'], p['b2']), p['g2'], p['be2'])
    return x


if __name__ == "__main__":
    key = jax.random.PRNGKey(0)
    ks = jax.random.split(key, 12)

    in_ch, out_ch = 8, 4
    C = in_ch // 2            # channels of x1 and x2 (standard UNet skip)
    N, H, W = 2, 8, 8         # x1 spatial; x2 is 2x larger

    x1 = jax.random.normal(ks[0], (N, C, H, W), jnp.float32)
    x2 = jax.random.normal(ks[1], (N, C, 2 * H, 2 * W), jnp.float32)

    params = dict(
        w_up=0.2 * jax.random.normal(ks[2], (C, C, 2, 2), jnp.float32),
        b_up=0.1 * jax.random.normal(ks[3], (C,), jnp.float32),
        w1=0.2 * jax.random.normal(ks[4], (out_ch, in_ch, 3, 3), jnp.float32),
        b1=0.1 * jax.random.normal(ks[5], (out_ch,), jnp.float32),
        g1=1.0 + 0.1 * jax.random.normal(ks[6], (out_ch,), jnp.float32),
        be1=0.1 * jax.random.normal(ks[7], (out_ch,), jnp.float32),
        w2=0.2 * jax.random.normal(ks[8], (out_ch, out_ch, 3, 3), jnp.float32),
        b2=0.1 * jax.random.normal(ks[9], (out_ch,), jnp.float32),
        g2=1.0 + 0.1 * jax.random.normal(ks[10], (out_ch,), jnp.float32),
        be2=0.1 * jax.random.normal(ks[11], (out_ch,), jnp.float32),
    )

    out = up_forward(x1, x2, params)
    out = jax.block_until_ready(out)
    assert out.shape == (N, out_ch, 2 * H, 2 * W), out.shape

    ref = ref_up_forward(x1, x2, params)
    max_err = float(jnp.max(jnp.abs(out - ref)))
    mean_err = float(jnp.mean(jnp.abs(out - ref)))
    # tolerances account for intentional bf16 MXU operands in the kernel vs a
    # HIGHEST-precision f32 reference; structural bugs give O(1) errors
    if max_err > 1e-1 or mean_err > 2e-2:
        raise AssertionError(
            f"mismatch vs reference: max abs err {max_err}, mean abs err {mean_err}")

    print("KERNEL_OK")
</pallas_src>

<mosaic_0001>
module attributes {stable_mosaic.version = 11 : i64} {
  func.func @upconv2x2_kernel(%arg0: memref<2x8x8x4xf32, #tpu.memory_space<vmem>>, %arg1: memref<4x16xbf16, #tpu.memory_space<vmem>>, %arg2: memref<1x16xf32, #tpu.memory_space<vmem>>, %arg3: memref<2x8x8x16xbf16, #tpu.memory_space<vmem>>) attributes {dimension_semantics = [], scalar_prefetch = 0 : i64, scratch_operands = 0 : i64, tpu.core_type = #tpu.core_type<tc>} {
    %c0 = arith.constant 0 : index
    %c0_0 = arith.constant 0 : index
    %c0_1 = arith.constant 0 : index
    %c0_2 = arith.constant 0 : index
    %0 = vector.load %arg0[%c0, %c0_0, %c0_1, %c0_2] : memref<2x8x8x4xf32, #tpu.memory_space<vmem>>, vector<2x8x8x4xf32>
    %1 = vector.shape_cast %0 : vector<2x8x8x4xf32> to vector<128x4xf32>
    %2 = arith.truncf %1 : vector<128x4xf32> to vector<128x4xbf16>
    %c0_3 = arith.constant 0 : index
    %c0_4 = arith.constant 0 : index
    %3 = vector.load %arg1[%c0_3, %c0_4] : memref<4x16xbf16, #tpu.memory_space<vmem>>, vector<4x16xbf16>
    %cst = arith.constant dense<0.000000e+00> : vector<128x16xf32>
    %4 = tpu.matmul %2, %3, %cst {dimension_numbers = #tpu.dot_dimension_numbers<[1], [0], [0], [1], [0, 0, 1, 1], [], []>} : vector<128x4xbf16>, vector<4x16xbf16>, vector<128x16xf32> -> vector<128x16xf32>
    %c0_5 = arith.constant 0 : index
    %c0_6 = arith.constant 0 : index
    %5 = vector.load %arg2[%c0_5, %c0_6] : memref<1x16xf32, #tpu.memory_space<vmem>>, vector<1x16xf32>
    %6 = vector.broadcast %5 : vector<1x16xf32> to vector<128x16xf32>
    %7 = arith.addf %4, %6 : vector<128x16xf32>
    %8 = vector.shape_cast %7 : vector<128x16xf32> to vector<2x8x8x16xf32>
    %9 = arith.truncf %8 : vector<2x8x8x16xf32> to vector<2x8x8x16xbf16>
    %c0_7 = arith.constant 0 : index
    %c0_8 = arith.constant 0 : index
    %c0_9 = arith.constant 0 : index
    %c0_10 = arith.constant 0 : index
    %10 = vector.load %arg3[%c0_7, %c0_8, %c0_9, %c0_10] : memref<2x8x8x16xbf16, #tpu.memory_space<vmem>>, vector<2x8x8x16xbf16>
    tpu.vector_store %arg3[%c0_7, %c0_8, %c0_9, %c0_10], %9 {strides = array<i32>} : memref<2x8x8x16xbf16, #tpu.memory_space<vmem>>, vector<2x8x8x16xbf16>,
    return
  }
}

</mosaic_0001>

<bundles_post_ra>
// kernel: tpu_custom_call.1
= control target key start
LH: loop header
LB: loop body
LE: loop exit
PB: predicated region body
PF: predicated region fallthrough
CT: control target
= control target key end

     0   :  { %vm70_vm0 = vcmask 1041408   ;;  %vm45_vm1 = vcmask 31744   ;;  %s337_s0 = inlined_call_operand.vmem [shape: f32[2,8,8,4], index: 0, kind: input, shape index: {}]   ;;  %s338_s1 = inlined_call_operand.vmem [shape: bf16[4,16], index: 1, kind: input, shape index: {}]   ;;  %s339_s2 = inlined_call_operand.vmem [shape: f32[1,16], index: 2, kind: input, shape index: {}]   ;;  %s340_s3 = inlined_call_operand.hbm [shape: bf16[2,8,8,16], index: 3, kind: output, shape index: {}]  }
   0x1   :  { %v40_v0 = vld [vmem:[%s338_s1] sm:$0x3]  ;;  %v17_v2 = vld [vmem:[%s337_s0 + $0x8] sm:$0xff] }
   0x2   :  { %v16_v1 = vld [vmem:[%s337_s0] sm:$0xff]  ;;  %v72_v3 = vsel %vm70_vm0, %v40_v0, 0  ;;  %v21_v6 = vld [vmem:[%s337_s0 + $0x28] sm:$0xff] }
   0x3   :  { %v32_v4 = vpack.c.bf16 %v17_v2, %v16_v1  ;;  %v20_v5 = vld [vmem:[%s337_s0 + $0x20] sm:$0xff]  ;;  %81 = vmatpush.bf16.msra.mxu0 %v72_v3  ;;  %182 = vmatpush.bf16.msra.mxu1 %v72_v3  ;;  %v25_v9 = vld [vmem:[%s337_s0 + $0x48] sm:$0xff] }
   0x4   :  { %v24_v7 = vld [vmem:[%s337_s0 + $0x40] sm:$0xff]  ;;  %v34_v8 = vpack.c.bf16 %v21_v6, %v20_v5  ;;  %v29_v11 = vld [vmem:[%s337_s0 + $0x68] sm:$0xff]  ;;  %183 = vmatpush.bf16.msra.mxu2 %v72_v3  ;;  %184 = vmatpush.bf16.msra.mxu3 %v72_v3 }
   0x5   :  { %v28_v10 = vld [vmem:[%s337_s0 + $0x60] sm:$0xff]  ;;  %v36_v12 = vpack.c.bf16 %v25_v9, %v24_v7 }
   0x6   :  { %v38_v13 = vpack.c.bf16 %v29_v11, %v28_v10  ;;  %174 = vmatmul.msk.bf16.vlgmr.msra.gmra.mxu0 %vm45_vm1, %v32_v4  ;;  %176 = vmatmul.msk.bf16.vlgmr.msra.gmra.mxu1 %vm45_vm1, %v34_v8 }
   0x7   :  { %178 = vmatmul.msk.bf16.vlgmr.msra.gmra.mxu2 %vm45_vm1, %v36_v12 }
   0x8   :  { %180 = vmatmul.msk.bf16.vlgmr.msra.gmra.mxu3 %vm45_vm1, %v38_v13 }
   0x9   :  { %8 = vsyncpa [#allocation3], 0  ;;  %v18_v14 = vld [vmem:[%s337_s0 + $0x10] sm:$0xff]  ;;  %v19_v15 = vld [vmem:[%s337_s0 + $0x18] sm:$0xff]  ;;  %vm139_vm2 = vcmask 125952   ;;  %s162_s1 = sshll.u32 %s340_s3, 4  ;;  %s163_s1 = int_to_ptr.hbm [resolvable:$true] %s162_s1 }
   0xa   :  { %v22_v16 = vld [vmem:[%s337_s0 + $0x30] sm:$0xff]  ;;  %v23_v17 = vld [vmem:[%s337_s0 + $0x38] sm:$0xff]  ;;  %v33_v22 = vpack.c.bf16 %v19_v15, %v18_v14  ;;  %v300_v26 = vld [vmem:[%s339_s2] ss:$0 sm:$0xff]  ;;  %s216_s22 = smov 64   ;;  %s217_s23 = smov 4  }
   0xb   :  { %v26_v18 = vld [vmem:[%s337_s0 + $0x50] sm:$0xff]  ;;  %v27_v19 = vld [vmem:[%s337_s0 + $0x58] sm:$0xff]  ;;  %v35_v23 = vpack.c.bf16 %v23_v17, %v22_v16 }
   0xc   :  { %v30_v20 = vld [vmem:[%s337_s0 + $0x70] sm:$0xff]  ;;  %v31_v21 = vld [vmem:[%s337_s0 + $0x78] sm:$0xff]  ;;  %v37_v24 = vpack.c.bf16 %v27_v19, %v26_v18  ;;  %s215_s0 = smov [#allocation2]  }
   0xd   :  { %v39_v25 = vpack.c.bf16 %v31_v21, %v30_v20  ;;  %s160_s2 = sshll.u32 %s215_s0, 4  ;;  %s161_s2 = int_to_ptr.vmem [resolvable:$true] %s160_s2 }
  0x16   :  { %175 = vmatmul.msk.bf16.gmra.mxu0 %vm45_vm1, %v33_v22  ;;  %177 = vmatmul.msk.bf16.gmra.mxu1 %vm45_vm1, %v35_v23 }
  0x17   :  { %179 = vmatmul.msk.bf16.gmra.mxu2 %vm45_vm1, %v37_v24 }
  0x18   :  { %181 = vmatmul.msk.bf16.gmra.mxu3 %vm45_vm1, %v39_v25 }
  0x83   :  { %v83_v27 = vpop.f32.mrf.mxu0  ;;  %v93_v28 = vpop.f32.mrf.mxu1 }
  0x84   :  { %v84_v29 = vadd.f32 %v300_v26, %v83_v27  ;;  %v94_v30 = vadd.f32 %v300_v26, %v93_v28 }
  0x86   :  { %v123_v31 = vpack.c.bf16 %v84_v29, %v84_v29  ;;  %v127_v32 = vpack.c.bf16 %v94_v30, %v94_v30 }
  0x88   :  { %140 = vst.msk [vmem:[#allocation2] sm:$0xf] %vm139_vm2, %v123_v31 }
  0x89   :  { %144 = vst.msk [vmem:[#allocation2 + $0x10] sm:$0xf] %vm139_vm2, %v127_v32 }
  0x8a   :  { %v103_v33 = vpop.f32.mrf.mxu2 }
  0x8b   :  { %v113_v34 = vpop.f32.mrf.mxu3  ;;  %v104_v35 = vadd.f32 %v300_v26, %v103_v33  ;;  %v85_v37 = vpop.f32.mrf.mxu0 }
  0x8c   :  { %v114_v36 = vadd.f32 %v300_v26, %v113_v34  ;;  %v95_v38 = vpop.f32.mrf.mxu1  ;;  %v86_v39 = vadd.f32 %v300_v26, %v85_v37 }
  0x8d   :  { %v96_v40 = vadd.f32 %v300_v26, %v95_v38  ;;  %v131_v41 = vpack.c.bf16 %v104_v35, %v104_v35 }
  0x8e   :  { %v135_v42 = vpack.c.bf16 %v114_v36, %v114_v36  ;;  %v124_v43 = vpack.c.bf16 %v86_v39, %v86_v39 }
  0x8f   :  { %v128_v44 = vpack.c.bf16 %v96_v40, %v96_v40  ;;  %148 = vst.msk [vmem:[#allocation2 + $0x20] sm:$0xf] %vm139_vm2, %v131_v41 }
  0x90   :  { %152 = vst.msk [vmem:[#allocation2 + $0x30] sm:$0xf] %vm139_vm2, %v135_v42 }
  0x91   :  { %141 = vst.msk [vmem:[#allocation2 + $0x4] sm:$0xf] %vm139_vm2, %v124_v43 }
  0x92   :  { %145 = vst.msk [vmem:[#allocation2 + $0x14] sm:$0xf] %vm139_vm2, %v128_v44  ;;  %v105_v45 = vpop.f32.mrf.mxu2 }
  0x93   :  { %v115_v46 = vpop.f32.mrf.mxu3  ;;  %v106_v47 = vadd.f32 %v300_v26, %v105_v45  ;;  %v88_v49 = vpop.f32.mrf.mxu0 }
  0x94   :  { %v116_v48 = vadd.f32 %v300_v26, %v115_v46  ;;  %v98_v50 = vpop.f32.mrf.mxu1  ;;  %v89_v51 = vadd.f32 %v300_v26, %v88_v49 }
  0x95   :  { %v99_v52 = vadd.f32 %v300_v26, %v98_v50  ;;  %v132_v53 = vpack.c.bf16 %v106_v47, %v106_v47 }
  0x96   :  { %v136_v54 = vpack.c.bf16 %v116_v48, %v116_v48  ;;  %v125_v55 = vpack.c.bf16 %v89_v51, %v89_v51 }
  0x97   :  { %v129_v56 = vpack.c.bf16 %v99_v52, %v99_v52  ;;  %149 = vst.msk [vmem:[#allocation2 + $0x24] sm:$0xf] %vm139_vm2, %v132_v53 }
  0x98   :  { %153 = vst.msk [vmem:[#allocation2 + $0x34] sm:$0xf] %vm139_vm2, %v136_v54 }
  0x99   :  { %142 = vst.msk [vmem:[#allocation2 + $0x8] sm:$0xf] %vm139_vm2, %v125_v55 }
  0x9a   :  { %146 = vst.msk [vmem:[#allocation2 + $0x18] sm:$0xf] %vm139_vm2, %v129_v56  ;;  %v108_v57 = vpop.f32.mrf.mxu2 }
  0x9b   :  { %v118_v58 = vpop.f32.mrf.mxu3  ;;  %v109_v59 = vadd.f32 %v300_v26, %v108_v57  ;;  %v90_v61 = vpop.f32.mrf.mxu0 }
  0x9c   :  { %v119_v60 = vadd.f32 %v300_v26, %v118_v58  ;;  %v100_v62 = vpop.f32.mrf.mxu1  ;;  %v91_v63 = vadd.f32 %v300_v26, %v90_v61 }
  0x9d   :  { %v101_v0 = vadd.f32 %v300_v26, %v100_v62  ;;  %v133_v1 = vpack.c.bf16 %v109_v59, %v109_v59 }
  0x9e   :  { %v137_v2 = vpack.c.bf16 %v119_v60, %v119_v60  ;;  %v126_v3 = vpack.c.bf16 %v91_v63, %v91_v63 }
  0x9f   :  { %v130_v4 = vpack.c.bf16 %v101_v0, %v101_v0  ;;  %150 = vst.msk [vmem:[#allocation2 + $0x28] sm:$0xf] %vm139_vm2, %v133_v1 }
  0xa0   :  { %154 = vst.msk [vmem:[#allocation2 + $0x38] sm:$0xf] %vm139_vm2, %v137_v2 }
  0xa1   :  { %143 = vst.msk [vmem:[#allocation2 + $0xc] sm:$0xf] %vm139_vm2, %v126_v3 }
  0xa2   :  { %147 = vst.msk [vmem:[#allocation2 + $0x1c] sm:$0xf] %vm139_vm2, %v130_v4  ;;  %v110_v5 = vpop.f32.mrf.mxu2 }
  0xa3   :  { %v120_v6 = vpop.f32.mrf.mxu3  ;;  %v111_v7 = vadd.f32 %v300_v26, %v110_v5 }
  0xa4   :  { %v121_v8 = vadd.f32 %v300_v26, %v120_v6 }
  0xa5   :  { %v134_v9 = vpack.c.bf16 %v111_v7, %v111_v7 }
  0xa6   :  { %v138_v10 = vpack.c.bf16 %v121_v8, %v121_v8 }
  0xa7   :  { %151 = vst.msk [vmem:[#allocation2 + $0x2c] sm:$0xf] %vm139_vm2, %v134_v9 }
  0xa8   :  { %155 = vst.msk [vmem:[#allocation2 + $0x3c] sm:$0xf] %vm139_vm2, %v138_v10 }
  0xa9   :  { %168 = dma.vmem_to_hbm [thread:$0]  %s161_s2, 1024, %s163_s1, [#allocation3], %s216_s22, %s216_s22, %s217_s23  }
  0xaa   :  { %213 = dma.done.wait [#allocation3], 1024  }
  0xab   :  { %214 = vsyncadd [#allocation3], 4294966272 }
  0xac   :  { %173 = vsyncpa [#allocation3], 1 }

</bundles_post_ra>
